<compile_context>
chip_gen: v7x
topology: tpu7x:2x2x1
jax: 0.10.0
libtpu: 0.0.40
codegen_flags: <defaults>
</compile_context>

<pallas_src>
from functools import partial

import jax
import jax.numpy as jnp
from jax.experimental import pallas as pl
from jax.experimental.pallas import tpu as pltpu

BN_EPS = 1e-5


def _round_up(v, m):
    return (v + m - 1) // m * m


def _mish(x):
    # mish(x) = x * tanh(softplus(x)).  With e = exp(x):
    #   tanh(log1p(e)) = ((1+e)^2 - 1) / ((1+e)^2 + 1) = (e*e + 2e) / (e*e + 2e + 2)
    # One EUP exp (clamped so e*e cannot overflow f32; for x >= 20 the ratio is exactly
    # 1 in f32) + cheap VPU mul/add + approx reciprocal (EUP vrcp).
    e = jnp.exp(jnp.minimum(x, 20.0))
    num = e * (e + 2.0)
    return x * num * pl.reciprocal(num + 2.0, approx=True)


def _make_kernel(inv_hw, fuse_first):
    """Build the kernel body.  fuse_first: single K=2C GEMM (requires C % 128 == 0)."""

    def kernel(*refs):
        if fuse_first:
            x_ref, w1_ref, b1_ref, w2_ref, b2_ref, out_ref, mx_acc, sm_acc = refs
        else:
            x_ref, w1m_ref, w1a_ref, b1_ref, w2_ref, b2_ref, out_ref, mx_acc, sm_acc = refs

        j = pl.program_id(1)                       # H*W chunk index ("arbitrary" axis)

        # Streamed x chunk: [tb, C, t_hw] bf16 -> f32 (all elementwise work in f32).
        x = x_ref[...].astype(jnp.float32)
        cmax = jnp.max(x, axis=-1)                 # [tb, C]
        csum = jnp.sum(x, axis=-1)                 # [tb, C]

        @pl.when(j == 0)
        def _init():
            mx_acc[...] = jnp.full_like(mx_acc, -jnp.inf)
            sm_acc[...] = jnp.zeros_like(sm_acc)

        mx_acc[...] = jnp.maximum(mx_acc[...], cmax)
        sm_acc[...] = sm_acc[...] + csum

        @pl.when(j == pl.num_programs(1) - 1)
        def _finalize():
            # AdaptiveConcatPool2d(1) + Mish (Dropout is identity in eval).
            hm = _mish(mx_acc[...]).astype(jnp.bfloat16)            # max-pool features
            ha = _mish(sm_acc[...] * inv_hw).astype(jnp.bfloat16)   # avg-pool features

            # BN1 + Dropout(eval) folded into the first linear.  MXU GEMMs in bf16 with
            # f32 accumulation.
            if fuse_first:
                h = jnp.dot(jnp.concatenate([hm, ha], axis=-1), w1_ref[...],
                            preferred_element_type=jnp.float32) + b1_ref[...]
            else:
                h = (jnp.dot(hm, w1m_ref[...], preferred_element_type=jnp.float32)
                     + jnp.dot(ha, w1a_ref[...], preferred_element_type=jnp.float32)
                     + b1_ref[...])
            h = _mish(h).astype(jnp.bfloat16)

            # BN2 + Dropout(eval) folded into the second linear; lane-dense [tb, n_pad].
            out_ref[...] = (jnp.dot(h, w2_ref[...], preferred_element_type=jnp.float32)
                            + b2_ref[...])

    return kernel


# ----------------------------- tiling / VMEM budget -----------------------------

def _vmem_capacity_bytes():
    """Physical VMEM per TensorCore (v5e/v6e: 128 MiB, v7x: 64 MiB).  Safe fallback."""
    try:
        cap = int(pltpu.get_tpu_info().vmem_capacity_bytes)
        if cap > 0:
            return cap
    except Exception:
        pass
    return 64 * 1024 * 1024


def _tile_bytes(tb, t_hw, C, hidden, n_pad):
    """Conservative VMEM estimate for one grid step (incl. pipeline double-buffering)."""
    c_sub = max(_round_up(C, 8), 8)            # sublane padding of x's middle dim
    hw_lane = max(_round_up(t_hw, 128), 128)   # lane padding of x's last dim
    c_lane = _round_up(C, 128)
    h_lane = _round_up(hidden, 128)
    x_elems = tb * c_sub * hw_lane
    x_bytes = 2 * x_elems * 2 + x_elems * 4          # bf16 double buffer + f32 upcast temp
    acc_bytes = 2 * tb * c_lane * 4                  # max/sum scratch accumulators
    tmp_bytes = 2 * tb * c_lane * 2 + 2 * tb * h_lane * 4   # hm/ha (bf16) + h temps (f32)
    w_bytes = 2 * (2 * C * hidden * 2 + hidden * n_pad * 2)  # bf16 weights (double-buffered)
    b_bytes = 2 * (8 * h_lane * 4 + 8 * n_pad * 4)           # biases (sublane-padded)
    out_bytes = 2 * tb * n_pad * 4
    return x_bytes + acc_bytes + tmp_bytes + w_bytes + b_bytes + out_bytes


def _choose_tiles(B, C, HW, hidden, n_pad, budget, max_hw_chunk):
    """Pick (batch_tile, hw_chunk): MXU-sized batch tile first, then chunk H*W to fit."""
    tb0 = 256 if B >= 256 else (128 if B >= 128 else _round_up(B, 8))
    tb_cands = [t for t in (256, 128, 64, 32, 16, 8) if t <= tb0] or [tb0]
    hw_cap = HW if max_hw_chunk is None else max(1, min(HW, max_hw_chunk))
    # Chunks must be exact divisors of HW and either lane-dense (mult of 128) or full.
    hw_cands = [d for d in range(hw_cap, 0, -1)
                if HW % d == 0 and (d == HW or d % 128 == 0)] or [HW]
    for tb in tb_cands:
        for t_hw in hw_cands:
            if _tile_bytes(tb, t_hw, C, hidden, n_pad) <= budget:
                return tb, t_hw
    return tb_cands[-1], hw_cands[-1]


# ----------------------------- parameters & folding -----------------------------

def init_head_v3_params(key, nc, n, hidden=512):
    """Synthetic HeadV3 eval-mode parameters (non-trivial BN stats to test folding)."""
    ks = jax.random.split(key, 12)
    c2 = 2 * nc
    g1 = jax.random.uniform(ks[0], (1, c2), jnp.float32, 0.8, 1.2)
    b1 = 0.1 * jax.random.normal(ks[1], (1, c2), jnp.float32)
    m1 = 0.1 * jax.random.normal(ks[2], (1, c2), jnp.float32)
    v1 = jax.random.uniform(ks[3], (1, c2), jnp.float32, 0.5, 1.5)
    w1 = jax.random.normal(ks[4], (c2, hidden), jnp.float32) * (2.0 / c2) ** 0.5
    bias1 = jax.random.uniform(ks[5], (1, hidden), jnp.float32, -0.1, 0.1)
    g2 = jax.random.uniform(ks[6], (1, hidden), jnp.float32, 0.8, 1.2)
    b2 = 0.1 * jax.random.normal(ks[7], (1, hidden), jnp.float32)
    m2 = 0.1 * jax.random.normal(ks[8], (1, hidden), jnp.float32)
    v2 = jax.random.uniform(ks[9], (1, hidden), jnp.float32, 0.5, 1.5)
    w2 = jax.random.normal(ks[10], (hidden, n), jnp.float32) * (2.0 / hidden) ** 0.5
    bias2 = jax.random.uniform(ks[11], (1, n), jnp.float32, -0.1, 0.1)
    return (g1, b1, m1, v1, w1, bias1, g2, b2, m2, v2, w2, bias2)


def _fold_bn_into_linear(g, b, m, v, w, bias):
    """Linear(BN_eval(h)) == h @ (scale * w) + (shift @ w + bias), exactly (f32)."""
    scale = g * jax.lax.rsqrt(v + BN_EPS)        # [1, in]
    shift = b - m * scale                        # [1, in]
    w_f = w * scale.reshape(-1, 1)               # [in, out]
    bias_f = bias + shift @ w                    # [1, out]
    return w_f, bias_f


# ----------------------------------- wrapper -----------------------------------

@partial(jax.jit, static_argnames=("max_hw_chunk",))
def head_v3_forward(x_nchw, params, *, max_hw_chunk=None):
    """x_nchw: [B, C, H, W] (PyTorch layout, any float dtype).  Returns [B, n] f32."""
    (g1, b1, m1, v1, w1, bias1, g2, b2, m2, v2, w2, bias2) = params
    B, C, H, W = x_nchw.shape
    HW = H * W
    hidden = w1.shape[-1]
    n = w2.shape[-1]
    n_pad = _round_up(n, 128)

    # [B, C, H*W]: a free reshape of the contiguous NCHW input (no transpose, no extra
    # HBM pass).  Stream at bf16; the kernel upcasts to f32 for all elementwise work.
    x = x_nchw.reshape(B, C, HW)
    if x.dtype != jnp.bfloat16:
        x = x.astype(jnp.bfloat16)

    # Fold eval-mode BatchNorms into the Linear layers (exact in f32).
    w1f, bias1f = _fold_bn_into_linear(g1, b1, m1, v1, w1, bias1)
    w2f, bias2f = _fold_bn_into_linear(g2, b2, m2, v2, w2, bias2)

    # Pad output features to a lane-dense multiple of 128 (unmasked vst).
    w2p = jnp.zeros((hidden, n_pad), jnp.float32).at[:, :n].set(w2f).astype(jnp.bfloat16)
    b2p = jnp.zeros((1, n_pad), jnp.float32).at[:, :n].set(bias2f)

    # Per-generation VMEM budget and tile selection.
    cap = _vmem_capacity_bytes()
    vmem_limit = int(cap * 0.8)                      # ~51 MiB on v7x, ~102 MiB on v5e/v6e
    budget = vmem_limit - 2 * 1024 * 1024            # headroom for compiler scratch
    tb, t_hw = _choose_tiles(B, C, HW, hidden, n_pad, budget, max_hw_chunk)

    Bp = _round_up(B, tb)
    if Bp != B:
        x = jnp.pad(x, ((0, Bp - B), (0, 0), (0, 0)))

    fuse_first = (C % 128 == 0)                      # lane-aligned concat possible
    w1_bf = w1f.astype(jnp.bfloat16)                 # [2C, hidden]
    if fuse_first:
        w_args = (w1_bf,)
        w_specs = [pl.BlockSpec((2 * C, hidden), lambda i, j: (0, 0))]
    else:
        w_args = (w1_bf[:C], w1_bf[C:])              # split: kills the concat entirely
        w_specs = [pl.BlockSpec((C, hidden), lambda i, j: (0, 0)),
                   pl.BlockSpec((C, hidden), lambda i, j: (0, 0))]

    kernel = _make_kernel(1.0 / HW, fuse_first)

    out = pl.pallas_call(
        kernel,
        out_shape=jax.ShapeDtypeStruct((Bp, n_pad), jnp.float32),
        grid=(Bp // tb, HW // t_hw),
        in_specs=[pl.BlockSpec((tb, C, t_hw), lambda i, j: (i, 0, j))]   # x: streamed
                 + w_specs
                 + [pl.BlockSpec((1, hidden), lambda i, j: (0, 0)),      # bias1 (pinned)
                    pl.BlockSpec((hidden, n_pad), lambda i, j: (0, 0)),  # w2 (pinned)
                    pl.BlockSpec((1, n_pad), lambda i, j: (0, 0))],      # bias2 (pinned)
        out_specs=pl.BlockSpec((tb, n_pad), lambda i, j: (i, 0)),
        scratch_shapes=[pltpu.VMEM((tb, C), jnp.float32),    # running max
                        pltpu.VMEM((tb, C), jnp.float32)],   # running sum
        compiler_params=pltpu.CompilerParams(
            dimension_semantics=("parallel", "arbitrary"),   # batch tiles x HW chunks
            vmem_limit_bytes=vmem_limit,
        ),
    )(x, *w_args, bias1f, w2p, b2p)

    return out[:B, :n]


# ---------------------------------- reference ----------------------------------

def head_v3_reference(x_nchw, params):
    """Pure-JAX eval-mode reference (f32 everywhere) for validation."""
    (g1, b1, m1, v1, w1, bias1, g2, b2, m2, v2, w2, bias2) = params
    B, C, H, W = x_nchw.shape
    xf = x_nchw.reshape(B, C, H * W).astype(jnp.float32)
    h = jnp.concatenate([xf.max(-1), xf.mean(-1)], axis=1)        # AdaptiveConcatPool2d
    h = h * jnp.tanh(jax.nn.softplus(h))                           # Mish
    h = (h - m1) * jax.lax.rsqrt(v1 + BN_EPS) * g1 + b1            # BN1 (eval)
    h = h @ w1 + bias1                                             # Linear1
    h = h * jnp.tanh(jax.nn.softplus(h))                           # Mish
    h = (h - m2) * jax.lax.rsqrt(v2 + BN_EPS) * g2 + b2            # BN2 (eval)
    return h @ w2 + bias2                                          # Linear2


if __name__ == "__main__":
    key = jax.random.PRNGKey(0)
    kx, kp, kx2, kp2 = jax.random.split(key, 4)

    # --- Test 1: the HeadV3 toy shapes (split-weight path, single HW chunk). ---
    B, nc, H, W = 2, 4, 16, 16
    n_classes = 10
    x = jax.random.normal(kx, (B, nc, H, W), jnp.float32).astype(jnp.bfloat16)
    params = init_head_v3_params(kp, nc, n_classes)

    out = jax.block_until_ready(head_v3_forward(x, params))
    assert out.shape == (B, n_classes), out.shape
    assert bool(jnp.all(jnp.isfinite(out)))
    ref = head_v3_reference(x, params)
    err = float(jnp.max(jnp.abs(out - ref) / (1.0 + jnp.abs(ref))))
    assert err < 1e-1, f"test1 rel err vs f32 reference: {err}"

    # --- Test 2: exercises the fused K=2C GEMM (C % 128 == 0), a multi-tile batch
    #     grid, and the chunked-HW "arbitrary" reduction axis (forced via max_hw_chunk).
    B2, nc2, H2, W2, n2 = 512, 128, 16, 16, 12
    x2 = jax.random.normal(kx2, (B2, nc2, H2, W2), jnp.float32).astype(jnp.bfloat16)
    params2 = init_head_v3_params(kp2, nc2, n2)

    out2 = jax.block_until_ready(head_v3_forward(x2, params2, max_hw_chunk=128))
    assert out2.shape == (B2, n2), out2.shape
    assert bool(jnp.all(jnp.isfinite(out2)))
    ref2 = head_v3_reference(x2, params2)
    err2 = float(jnp.max(jnp.abs(out2 - ref2) / (1.0 + jnp.abs(ref2))))
    assert err2 < 1e-1, f"test2 rel err vs f32 reference: {err2}"

    print("KERNEL_OK")
</pallas_src>

<mosaic_0001>
module attributes {stable_mosaic.version = 11 : i64} {
  func.func @kernel(%arg0: i32, %arg1: i32, %arg2: memref<8x4x256xbf16, #tpu.memory_space<vmem>>, %arg3: memref<4x512xbf16, #tpu.memory_space<vmem>>, %arg4: memref<4x512xbf16, #tpu.memory_space<vmem>>, %arg5: memref<1x512xf32, #tpu.memory_space<vmem>>, %arg6: memref<512x128xbf16, #tpu.memory_space<vmem>>, %arg7: memref<1x128xf32, #tpu.memory_space<vmem>>, %arg8: memref<8x128xf32, #tpu.memory_space<vmem>>, %arg9: memref<8x4xf32, #tpu.memory_space<vmem>>, %arg10: memref<8x4xf32, #tpu.memory_space<vmem>>) attributes {dimension_semantics = [#tpu.dimension_semantics<parallel>, #tpu.dimension_semantics<arbitrary>], iteration_bounds = array<i64: 1, 1>, scalar_prefetch = 0 : i64, scratch_operands = 2 : i64, tpu.core_type = #tpu.core_type<tc>, window_params = [{transform_indices = @transform_0, window_bounds = array<i64: 8, 4, 256>}, {pipeline_mode = #tpu.pipeline_mode<synchronous>, transform_indices = @transform_1, window_bounds = array<i64: 4, 512>}, {pipeline_mode = #tpu.pipeline_mode<synchronous>, transform_indices = @transform_2, window_bounds = array<i64: 4, 512>}, {pipeline_mode = #tpu.pipeline_mode<synchronous>, transform_indices = @transform_3, window_bounds = array<i64: 1, 512>}, {pipeline_mode = #tpu.pipeline_mode<synchronous>, transform_indices = @transform_4, window_bounds = array<i64: 512, 128>}, {pipeline_mode = #tpu.pipeline_mode<synchronous>, transform_indices = @transform_5, window_bounds = array<i64: 1, 128>}, {transform_indices = @transform_6, window_bounds = array<i64: 8, 128>}]} {
    %c0 = arith.constant 0 : index
    %c0_0 = arith.constant 0 : index
    %c0_1 = arith.constant 0 : index
    %0 = vector.load %arg2[%c0, %c0_0, %c0_1] : memref<8x4x256xbf16, #tpu.memory_space<vmem>>, vector<8x4x256xbf16>
    %1 = arith.extf %0 : vector<8x4x256xbf16> to vector<8x4x256xf32>
    %cst = arith.constant dense<0xFF800000> : vector<8x4xf32>
    %2 = vector.multi_reduction <maximumf>, %1, %cst [2] : vector<8x4x256xf32> to vector<8x4xf32>
    %cst_2 = arith.constant dense<0.000000e+00> : vector<8x4xf32>
    %3 = vector.multi_reduction <add>, %1, %cst_2 [2] : vector<8x4x256xf32> to vector<8x4xf32>
    %c0_i32 = arith.constant 0 : i32
    %4 = arith.cmpi eq, %arg1, %c0_i32 : i32
    %5 = arith.extui %4 : i1 to i32
    %c0_i32_3 = arith.constant 0 : i32
    %6 = arith.cmpi ne, %5, %c0_i32_3 : i32
    scf.if %6 {
      %cst_14 = arith.constant 0xFF800000 : f32
      %16 = vector.broadcast %cst_14 : f32 to vector<8x4xf32>
      %c0_15 = arith.constant 0 : index
      %c0_16 = arith.constant 0 : index
      %17 = vector.load %arg9[%c0_15, %c0_16] : memref<8x4xf32, #tpu.memory_space<vmem>>, vector<8x4xf32>
      tpu.vector_store %arg9[%c0_15, %c0_16], %16 {strides = array<i32>} : memref<8x4xf32, #tpu.memory_space<vmem>>, vector<8x4xf32>,
      %cst_17 = arith.constant 0.000000e+00 : f32
      %18 = vector.broadcast %cst_17 : f32 to vector<8x4xf32>
      %c0_18 = arith.constant 0 : index
      %c0_19 = arith.constant 0 : index
      %19 = vector.load %arg10[%c0_18, %c0_19] : memref<8x4xf32, #tpu.memory_space<vmem>>, vector<8x4xf32>
      tpu.vector_store %arg10[%c0_18, %c0_19], %18 {strides = array<i32>} : memref<8x4xf32, #tpu.memory_space<vmem>>, vector<8x4xf32>,
    } else {
    }
    %c0_4 = arith.constant 0 : index
    %c0_5 = arith.constant 0 : index
    %7 = vector.load %arg9[%c0_4, %c0_5] : memref<8x4xf32, #tpu.memory_space<vmem>>, vector<8x4xf32>
    %8 = arith.maximumf %7, %2 : vector<8x4xf32>
    %c0_6 = arith.constant 0 : index
    %c0_7 = arith.constant 0 : index
    %9 = vector.load %arg9[%c0_6, %c0_7] : memref<8x4xf32, #tpu.memory_space<vmem>>, vector<8x4xf32>
    tpu.vector_store %arg9[%c0_6, %c0_7], %8 {strides = array<i32>} : memref<8x4xf32, #tpu.memory_space<vmem>>, vector<8x4xf32>,
    %c0_8 = arith.constant 0 : index
    %c0_9 = arith.constant 0 : index
    %10 = vector.load %arg10[%c0_8, %c0_9] : memref<8x4xf32, #tpu.memory_space<vmem>>, vector<8x4xf32>
    %11 = arith.addf %10, %3 : vector<8x4xf32>
    %c0_10 = arith.constant 0 : index
    %c0_11 = arith.constant 0 : index
    %12 = vector.load %arg10[%c0_10, %c0_11] : memref<8x4xf32, #tpu.memory_space<vmem>>, vector<8x4xf32>
    tpu.vector_store %arg10[%c0_10, %c0_11], %11 {strides = array<i32>} : memref<8x4xf32, #tpu.memory_space<vmem>>, vector<8x4xf32>,
    %c0_i32_12 = arith.constant 0 : i32
    %13 = arith.cmpi eq, %arg1, %c0_i32_12 : i32
    %14 = arith.extui %13 : i1 to i32
    %c0_i32_13 = arith.constant 0 : i32
    %15 = arith.cmpi ne, %14, %c0_i32_13 : i32
    scf.if %15 {
      %c0_14 = arith.constant 0 : index
      %c0_15 = arith.constant 0 : index
      %16 = vector.load %arg9[%c0_14, %c0_15] : memref<8x4xf32, #tpu.memory_space<vmem>>, vector<8x4xf32>
      %cst_16 = arith.constant 2.000000e+01 : f32
      %17 = vector.broadcast %cst_16 : f32 to vector<8x4xf32>
      %18 = arith.minimumf %16, %17 : vector<8x4xf32>
      %19 = math.exp %18 : vector<8x4xf32>
      %cst_17 = arith.constant 2.000000e+00 : f32
      %20 = vector.broadcast %cst_17 : f32 to vector<8x4xf32>
      %21 = arith.addf %19, %20 : vector<8x4xf32>
      %22 = arith.mulf %19, %21 : vector<8x4xf32>
      %23 = arith.mulf %16, %22 : vector<8x4xf32>
      %cst_18 = arith.constant 2.000000e+00 : f32
      %24 = vector.broadcast %cst_18 : f32 to vector<8x4xf32>
      %25 = arith.addf %22, %24 : vector<8x4xf32>
      %26 = tpu.reciprocal %25 {approx = true} : vector<8x4xf32> -> vector<8x4xf32>
      %27 = arith.mulf %23, %26 : vector<8x4xf32>
      %28 = arith.truncf %27 : vector<8x4xf32> to vector<8x4xbf16>
      %c0_19 = arith.constant 0 : index
      %c0_20 = arith.constant 0 : index
      %29 = vector.load %arg10[%c0_19, %c0_20] : memref<8x4xf32, #tpu.memory_space<vmem>>, vector<8x4xf32>
      %cst_21 = arith.constant 3.906250e-03 : f32
      %30 = vector.broadcast %cst_21 : f32 to vector<8x4xf32>
      %31 = arith.mulf %29, %30 : vector<8x4xf32>
      %cst_22 = arith.constant 2.000000e+01 : f32
      %32 = vector.broadcast %cst_22 : f32 to vector<8x4xf32>
      %33 = arith.minimumf %31, %32 : vector<8x4xf32>
      %34 = math.exp %33 : vector<8x4xf32>
      %cst_23 = arith.constant 2.000000e+00 : f32
      %35 = vector.broadcast %cst_23 : f32 to vector<8x4xf32>
      %36 = arith.addf %34, %35 : vector<8x4xf32>
      %37 = arith.mulf %34, %36 : vector<8x4xf32>
      %38 = arith.mulf %31, %37 : vector<8x4xf32>
      %cst_24 = arith.constant 2.000000e+00 : f32
      %39 = vector.broadcast %cst_24 : f32 to vector<8x4xf32>
      %40 = arith.addf %37, %39 : vector<8x4xf32>
      %41 = tpu.reciprocal %40 {approx = true} : vector<8x4xf32> -> vector<8x4xf32>
      %42 = arith.mulf %38, %41 : vector<8x4xf32>
      %43 = arith.truncf %42 : vector<8x4xf32> to vector<8x4xbf16>
      %c0_25 = arith.constant 0 : index
      %c0_26 = arith.constant 0 : index
      %44 = vector.load %arg3[%c0_25, %c0_26] : memref<4x512xbf16, #tpu.memory_space<vmem>>, vector<4x512xbf16>
      %cst_27 = arith.constant dense<0.000000e+00> : vector<8x512xf32>
      %45 = tpu.matmul %28, %44, %cst_27 {dimension_numbers = #tpu.dot_dimension_numbers<[1], [0], [0], [1], [0, 0, 1, 1], [], []>} : vector<8x4xbf16>, vector<4x512xbf16>, vector<8x512xf32> -> vector<8x512xf32>
      %c0_28 = arith.constant 0 : index
      %c0_29 = arith.constant 0 : index
      %46 = vector.load %arg4[%c0_28, %c0_29] : memref<4x512xbf16, #tpu.memory_space<vmem>>, vector<4x512xbf16>
      %cst_30 = arith.constant dense<0.000000e+00> : vector<8x512xf32>
      %47 = tpu.matmul %43, %46, %cst_30 {dimension_numbers = #tpu.dot_dimension_numbers<[1], [0], [0], [1], [0, 0, 1, 1], [], []>} : vector<8x4xbf16>, vector<4x512xbf16>, vector<8x512xf32> -> vector<8x512xf32>
      %48 = arith.addf %45, %47 : vector<8x512xf32>
      %c0_31 = arith.constant 0 : index
      %c0_32 = arith.constant 0 : index
      %49 = vector.load %arg5[%c0_31, %c0_32] : memref<1x512xf32, #tpu.memory_space<vmem>>, vector<1x512xf32>
      %50 = vector.broadcast %49 : vector<1x512xf32> to vector<8x512xf32>
      %51 = arith.addf %48, %50 : vector<8x512xf32>
      %cst_33 = arith.constant 2.000000e+01 : f32
      %52 = vector.broadcast %cst_33 : f32 to vector<8x512xf32>
      %53 = arith.minimumf %51, %52 : vector<8x512xf32>
      %54 = math.exp %53 : vector<8x512xf32>
      %cst_34 = arith.constant 2.000000e+00 : f32
      %55 = vector.broadcast %cst_34 : f32 to vector<8x512xf32>
      %56 = arith.addf %54, %55 : vector<8x512xf32>
      %57 = arith.mulf %54, %56 : vector<8x512xf32>
      %58 = arith.mulf %51, %57 : vector<8x512xf32>
      %cst_35 = arith.constant 2.000000e+00 : f32
      %59 = vector.broadcast %cst_35 : f32 to vector<8x512xf32>
      %60 = arith.addf %57, %59 : vector<8x512xf32>
      %61 = tpu.reciprocal %60 {approx = true} : vector<8x512xf32> -> vector<8x512xf32>
      %62 = arith.mulf %58, %61 : vector<8x512xf32>
      %63 = arith.truncf %62 : vector<8x512xf32> to vector<8x512xbf16>
      %c0_36 = arith.constant 0 : index
      %c0_37 = arith.constant 0 : index
      %64 = vector.load %arg6[%c0_36, %c0_37] : memref<512x128xbf16, #tpu.memory_space<vmem>>, vector<512x128xbf16>
      %cst_38 = arith.constant dense<0.000000e+00> : vector<8x128xf32>
      %65 = tpu.matmul %63, %64, %cst_38 {dimension_numbers = #tpu.dot_dimension_numbers<[1], [0], [0], [1], [0, 0, 1, 1], [], []>} : vector<8x512xbf16>, vector<512x128xbf16>, vector<8x128xf32> -> vector<8x128xf32>
      %c0_39 = arith.constant 0 : index
      %c0_40 = arith.constant 0 : index
      %66 = vector.load %arg7[%c0_39, %c0_40] : memref<1x128xf32, #tpu.memory_space<vmem>>, vector<1x128xf32>
      %67 = vector.broadcast %66 : vector<1x128xf32> to vector<8x128xf32>
      %68 = arith.addf %65, %67 : vector<8x128xf32>
      %c0_41 = arith.constant 0 : index
      %c0_42 = arith.constant 0 : index
      %69 = vector.load %arg8[%c0_41, %c0_42] : memref<8x128xf32, #tpu.memory_space<vmem>>, vector<8x128xf32>
      tpu.vector_store %arg8[%c0_41, %c0_42], %68 {strides = array<i32>} : memref<8x128xf32, #tpu.memory_space<vmem>>, vector<8x128xf32>,
    } else {
    }
    return
  }
  func.func @transform_0(%arg0: i32, %arg1: i32) -> (i32, i32, i32) {
    %c0_i32 = arith.constant 0 : i32
    %c0_i32_0 = arith.constant 0 : i32
    return %arg0, %c0_i32, %arg1 : i32, i32, i32
  }
  func.func @transform_1(%arg0: i32, %arg1: i32) -> (i32, i32) {
    %c0_i32 = arith.constant 0 : i32
    %c0_i32_0 = arith.constant 0 : i32
    %c0_i32_1 = arith.constant 0 : i32
    return %c0_i32, %c0_i32_0 : i32, i32
  }
  func.func @transform_2(%arg0: i32, %arg1: i32) -> (i32, i32) {
    %c0_i32 = arith.constant 0 : i32
    %c0_i32_0 = arith.constant 0 : i32
    %c0_i32_1 = arith.constant 0 : i32
    return %c0_i32, %c0_i32_0 : i32, i32
  }
  func.func @transform_3(%arg0: i32, %arg1: i32) -> (i32, i32) {
    %c0_i32 = arith.constant 0 : i32
    %c0_i32_0 = arith.constant 0 : i32
    %c0_i32_1 = arith.constant 0 : i32
    return %c0_i32, %c0_i32_0 : i32, i32
  }
  func.func @transform_4(%arg0: i32, %arg1: i32) -> (i32, i32) {
    %c0_i32 = arith.constant 0 : i32
    %c0_i32_0 = arith.constant 0 : i32
    %c0_i32_1 = arith.constant 0 : i32
    return %c0_i32, %c0_i32_0 : i32, i32
  }
  func.func @transform_5(%arg0: i32, %arg1: i32) -> (i32, i32) {
    %c0_i32 = arith.constant 0 : i32
    %c0_i32_0 = arith.constant 0 : i32
    %c0_i32_1 = arith.constant 0 : i32
    return %c0_i32, %c0_i32_0 : i32, i32
  }
  func.func @transform_6(%arg0: i32, %arg1: i32) -> (i32, i32) {
    %c0_i32 = arith.constant 0 : i32
    %c0_i32_0 = arith.constant 0 : i32
    return %arg0, %c0_i32 : i32, i32
  }
}

</mosaic_0001>

<bundles_post_ra>
// kernel: head_v3_forward.1
= control target key start
LH: loop header
LB: loop body
LE: loop exit
PB: predicated region body
PF: predicated region fallthrough
CT: control target
= control target key end

     0   :  { %vm64_vm0 = vcmask 1043456   ;;  %vm149_vm1 = vcmask 31744   ;;  %vm313_vm2 = vcmask 1041408   ;;  %vm195_vm3 = vcmask 1041409   ;;  %s1351_s0 = inlined_call_operand.vmem [shape: bf16[8,4,256], index: 0, kind: input, shape index: {}]   ;;  %s1352_s2 = inlined_call_operand.vmem [shape: bf16[4,512], index: 2, kind: input, shape index: {}]   ;;  %s1353_s1 = inlined_call_operand.vmem [shape: bf16[4,512], index: 1, kind: input, shape index: {}]   ;;  %s1354_s4 = inlined_call_operand.vmem [shape: bf16[512,128], index: 4, kind: input, shape index: {}]   ;;  %s1355_s3 = inlined_call_operand.vmem [shape: f32[1,512], index: 3, kind: input, shape index: {}]   ;;  %s1356_s5 = inlined_call_operand.vmem [shape: f32[1,128], index: 5, kind: input, shape index: {}]   ;;  %s1357_s6 = inlined_call_operand.vmem [shape: f32[8,128], index: 6, kind: output, shape index: {}]  }
   0x1   :  { %v994_v0 = vld [vmem:[%s1351_s0 + $0x8] sm:$0xff]   ;;  %v979_v1 = vld [vmem:[%s1351_s0] sm:$0xff]   ;;  %v995_v2 = vld [vmem:[%s1351_s0 + $0x10] sm:$0xff]   ;;  %vm197_vm4 = vcmask 1042434   ;;  %vm199_vm5 = vcmask 1043459   ;;  %vm201_vm6 = vcmask 1044484  }
   0x2   :  { %v984_v3 = vunpack.c.l.bf16 %v994_v0  ;;  %v980_v4 = vunpack.c.l.bf16 %v979_v1  ;;  %v985_v5 = vunpack.c.h.bf16 %v994_v0  ;;  %v981_v6 = vunpack.c.h.bf16 %v979_v1  ;;  %v996_v7 = vld [vmem:[%s1351_s0 + $0x18] sm:$0xff]  }
   0x3   :  { %v989_v8 = vunpack.c.h.bf16 %v995_v2  ;;  %v988_v9 = vunpack.c.l.bf16 %v995_v2  ;;  %v1154_v10 = vunpack.c.h.bf16 %v996_v7  ;;  %v992_v18 = vunpack.c.l.bf16 %v996_v7  ;;  %v291_v7 = vld [vmem:[%s1352_s2] sm:$0xff] }
   0x4   :  { %v50_v11 = vcombine.high %v984_v3, %v984_v3  ;;  %v115_v12 = vsel %vm64_vm0, %v984_v3, 0.0  ;;  %v48_v13 = vcombine.high %v980_v4, %v980_v4  ;;  %v105_v14 = vsel %vm64_vm0, %v980_v4, 0.0 }
   0x5   :  { %v51_v15 = vcombine.high %v985_v5, %v985_v5  ;;  %v120_v16 = vsel %vm64_vm0, %v985_v5, 0.0  ;;  %v49_v17 = vcombine.high %v981_v6, %v981_v6  ;;  %v110_v21 = vsel %vm64_vm0, %v981_v6, 0.0 }
   0x6   :  { %v116_v19 = vsel %vm64_vm0, %v50_v11, 0.0  ;;  %v106_v20 = vsel %vm64_vm0, %v48_v13, 0.0  ;;  %v53_v22 = vcombine.high %v989_v8, %v989_v8  ;;  %v52_v27 = vcombine.high %v988_v9, %v988_v9 }
   0x7   :  { %v117_v23 = vadd.f32 %v116_v19, %v115_v12  ;;  %v107_v24 = vadd.f32 %v106_v20, %v105_v14  ;;  %v121_v25 = vsel %vm64_vm0, %v51_v15, 0.0  ;;  %v111_v26 = vsel %vm64_vm0, %v49_v17, 0.0 }
   0x8   :  { %v122_v28 = vadd.f32 %v121_v25, %v120_v16  ;;  %v112_v29 = vadd.f32 %v111_v26, %v110_v21  ;;  %v130_v30 = vsel %vm64_vm0, %v989_v8, 0.0  ;;  %v131_v31 = vsel %vm64_vm0, %v53_v22, 0.0  ;;  %v290_v21 = vld [vmem:[%s1353_s1] sm:$0xff] }
   0x9   :  { %118 = vadd.xlane.f32.xlu1 %v117_v23  ;;  %108 = vadd.xlane.f32.xlu0 %v107_v24  ;;  %v125_v32 = vsel %vm64_vm0, %v988_v9, 0.0  ;;  %v126_v33 = vsel %vm64_vm0, %v52_v27, 0.0  ;;  %v55_v34 = vcombine.high %v1154_v10, %v1154_v10  ;;  %v54_v35 = vcombine.high %v992_v18, %v992_v18 }
   0xa   :  { %v132_v36 = vadd.f32 %v131_v31, %v130_v30  ;;  %v127_v37 = vadd.f32 %v126_v33, %v125_v32  ;;  %v140_v38 = vsel %vm64_vm0, %v1154_v10, 0.0  ;;  %v135_v40 = vsel %vm64_vm0, %v992_v18, 0.0 }
   0xb   :  { %v141_v39 = vsel %vm64_vm0, %v55_v34, 0.0  ;;  %v136_v41 = vsel %vm64_vm0, %v54_v35, 0.0  ;;  %v70_v44 = vsel %vm64_vm0, %v981_v6, -inf  ;;  %v71_v45 = vsel %vm64_vm0, %v49_v17, -inf }
   0xc   :  { %v142_v42 = vadd.f32 %v141_v39, %v140_v38  ;;  %v137_v43 = vadd.f32 %v136_v41, %v135_v40  ;;  %v65_v46 = vsel %vm64_vm0, %v980_v4, -inf  ;;  %v66_v47 = vsel %vm64_vm0, %v48_v13, -inf }
   0xd   :  { %123 = vadd.xlane.f32.xlu1 %v122_v28  ;;  %113 = vadd.xlane.f32.xlu0 %v112_v29  ;;  %v72_v48 = vmax.f32 %v70_v44, %v71_v45  ;;  %v67_v49 = vmax.f32 %v65_v46, %v66_v47  ;;  %v75_v50 = vsel %vm64_vm0, %v984_v3, -inf  ;;  %v76_v51 = vsel %vm64_vm0, %v50_v11, -inf }
   0xe   :  { %v80_v52 = vsel %vm64_vm0, %v985_v5, -inf  ;;  %v81_v53 = vsel %vm64_vm0, %v51_v15, -inf  ;;  %v77_v54 = vmax.f32 %v75_v50, %v76_v51  ;;  %v85_v56 = vsel %vm64_vm0, %v988_v9, -inf }
   0xf   :  { %v82_v55 = vmax.f32 %v80_v52, %v81_v53  ;;  %v86_v57 = vsel %vm64_vm0, %v52_v27, -inf  ;;  %v90_v58 = vsel %vm64_vm0, %v989_v8, -inf  ;;  %v91_v59 = vsel %vm64_vm0, %v53_v22, -inf }
  0x10   :  { %v87_v60 = vmax.f32 %v85_v56, %v86_v57  ;;  %v92_v61 = vmax.f32 %v90_v58, %v91_v59  ;;  %v95_v62 = vsel %vm64_vm0, %v992_v18, -inf  ;;  %v96_v63 = vsel %vm64_vm0, %v54_v35, -inf }
  0x11   :  { %133 = vadd.xlane.f32.xlu1 %v132_v36  ;;  %128 = vadd.xlane.f32.xlu0 %v127_v37  ;;  %v100_v0 = vsel %vm64_vm0, %v1154_v10, -inf  ;;  %v101_v1 = vsel %vm64_vm0, %v55_v34, -inf  ;;  %v1103_v2 = vmov 0.0   ;;  %v97_v3 = vmax.f32 %v95_v62, %v96_v63 }
  0x12   :  { %151 = vst.msk [vmem:[#allocation3] sm:$0xff] %vm149_vm1, %v1103_v2  ;;  %v102_v4 = vmax.f32 %v100_v0, %v101_v1  ;;  %v1104_v5 = vmov -inf   ;;  %v161_v6 = vlaneseq  ;;  %v1105_v8 = vmov 1983009808  }
  0x13   :  { %150 = vst.msk [vmem:[#allocation2] sm:$0xff] %vm149_vm1, %v1104_v5  ;;  %v295_v9 = vunpack.c.l.s4 %v1105_v8  ;;  %v1106_v10 = vmov 0   ;;  %v293_v13 = vcombine.high %v291_v7, %v291_v7  ;;  %v409_v23 = vcombine.high %v290_v21, %v290_v21 }
  0x14   :  { %358 = vmatprep.mubr.bf16.mxu0 %v1106_v10  ;;  %399 = vmatprep.mubr.bf16.mxu1 %v1106_v10  ;;  %v1199_v11 = vshrl.u32 %v161_v6, 7  ;;  %v162_v29 = vand.u32 127, %v161_v6  ;;  %vm203_vm7 = vcmask 1045509   ;;  %vm205_vm8 = vcmask 1046534  }
  0x15   :  { %143 = vadd.xlane.f32.xlu1 %v142_v42  ;;  %138 = vadd.xlane.f32.xlu0 %v137_v43  ;;  %v296_v12 = vunpack.c.0.s8 %v295_v9  ;;  %vm207_vm9 = vcmask 1047559  }
  0x16   :  { %v165_v32 = vsub.s32 %v162_v29, %v1199_v11 }
  0x17   :  { %v299_v14 = vsub.s32 %v296_v12, %v1199_v11 }
  0x19   :  { %73 = vmax.xlane.f32.xlu1 %v72_v48  ;;  %68 = vmax.xlane.f32.xlu0 %v67_v49  ;;  %v300_v15 = vrot.slane %v291_v7, %v299_v14  ;;  %v307_v16 = vrot.slane %v293_v13, %v299_v14  ;;  %v416_v22 = vrot.slane %v290_v21, %v299_v14  ;;  %v213_v51 = vld [vmem:[#allocation3] sm:$0xff] }
  0x1a   :  { %v423_v26 = vrot.slane %v409_v23, %v299_v14 }
  0x1b   :  { %v308_v17 = vcombine.high %v300_v15, %v300_v15  ;;  %v309_v18 = vcombine.high %v307_v16, %v307_v16  ;;  %v315_v19 = vsel %vm313_vm2, %v300_v15, 0  ;;  %v321_v20 = vsel %vm313_vm2, %v307_v16, 0 }
  0x1c   :  { %v424_v24 = vcombine.high %v416_v22, %v416_v22  ;;  %v1210_v25 = vsel %vm313_vm2, %v416_v22, 0  ;;  %v425_v27 = vcombine.high %v423_v26, %v423_v26  ;;  %v1214_v28 = vsel %vm313_vm2, %v423_v26, 0 }
  0x1d   :  { %78 = vmax.xlane.f32.xlu0 %v77_v54  ;;  %83 = vmax.xlane.f32.xlu1 %v82_v55 }
  0x1e   :  { %937 = vmatprep.subr.msk.bf16.mxu0 %vm313_vm2, %v308_v17  ;;  %939 = vmatprep.subr.msk.bf16.mxu1 %vm313_vm2, %v309_v18  ;;  %v152_v18 = vld [vmem:[#allocation2] sm:$0xff] }
  0x1f   :  { %327 = vmatpush1.bf16.msra.mxu0 %v315_v19  ;;  %368 = vmatpush1.bf16.msra.mxu1 %v321_v20 }
  0x20   :  { %941 = vmatprep.subr.msk.bf16.mxu0 %vm313_vm2, %v424_v24  ;;  %943 = vmatprep.subr.msk.bf16.mxu1 %vm313_vm2, %v425_v27 }
  0x21   :  { %88 = vmax.xlane.f32.xlu0 %v87_v60  ;;  %93 = vmax.xlane.f32.xlu1 %v92_v61 }
  0x25   :  { %98 = vmax.xlane.f32.xlu0 %v97_v3  ;;  %103 = vmax.xlane.f32.xlu1 %v102_v4 }
  0x96   :  { %v119_v30 = vpop.xlane.xlu1 %118  ;;  %v109_v31 = vpop.xlane.xlu0 %108 }
  0x97   :  { %v225_v35 = vrot.slane %v109_v31, %v165_v32  ;;  %v233_v38 = vrot.slane %v119_v30, %v165_v32 }
  0x9a   :  { %v124_v33 = vpop.xlane.xlu1 %123  ;;  %v114_v34 = vpop.xlane.xlu0 %113 }
  0x9b   :  { %v237_v36 = vrot.slane %v124_v33, %v165_v32  ;;  %v229_v37 = vrot.slane %v114_v34, %v165_v32 }
  0x9d   :  { %v254_v39 = vsel %vm195_vm3, %v229_v37, %v225_v35 }
  0x9e   :  { %v255_v40 = vsel %vm197_vm4, %v233_v38, %v254_v39  ;;  %v134_v41 = vpop.xlane.xlu1 %133  ;;  %v129_v42 = vpop.xlane.xlu0 %128 }
  0x9f   :  { %v256_v43 = vsel %vm199_vm5, %v237_v36, %v255_v40  ;;  %v241_v44 = vrot.slane %v129_v42, %v165_v32  ;;  %v245_v45 = vrot.slane %v134_v41, %v165_v32 }
  0xa1   :  { %v257_v46 = vsel %vm201_vm6, %v241_v44, %v256_v43  ;;  %v1047_v44 = vld [vmem:[%s1354_s4 + $0x40] sm:$0xff]  }
  0xa2   :  { %v144_v47 = vpop.xlane.xlu1 %143  ;;  %v139_v48 = vpop.xlane.xlu0 %138  ;;  %v258_v52 = vsel %vm203_vm7, %v245_v45, %v257_v46  ;;  %v1051_v45 = vld [vmem:[%s1354_s4 + $0x48] sm:$0xff]  }
  0xa3   :  { %v253_v49 = vrot.slane %v144_v47, %v165_v32  ;;  %v249_v50 = vrot.slane %v139_v48, %v165_v32  ;;  %v1052_v46 = vld [vmem:[%s1354_s4 + $0xc8] sm:$0xff]  }
  0xa4   :  { %v1053_v47 = vld [vmem:[%s1354_s4 + $0x8] sm:$0xff]  }
  0xa5   :  { %v259_v53 = vsel %vm205_vm8, %v249_v50, %v258_v52  ;;  %v1054_v48 = vld [vmem:[%s1354_s4 + $0x88] sm:$0xff]   ;;  %v1056_v50 = vld [vmem:[%s1354_s4 + $0xd0] sm:$0xff]  }
  0xa6   :  { %v260_v54 = vsel %vm207_vm9, %v253_v49, %v259_v53  ;;  %v74_v55 = vpop.xlane.xlu1 %73  ;;  %v69_v56 = vpop.xlane.xlu0 %68  ;;  %v1055_v49 = vld [vmem:[%s1354_s4 + $0x50] sm:$0xff]   ;;  %v1059_v53 = vld [vmem:[%s1354_s4 + $0x58] sm:$0xff]  }
  0xa7   :  { %v262_v57 = vadd.f32 %v260_v54, %v213_v51  ;;  %v170_v58 = vrot.slane %v74_v55, %v165_v32  ;;  %v166_v59 = vrot.slane %v69_v56, %v165_v32  ;;  %v1057_v51 = vld [vmem:[%s1354_s4 + $0x10] sm:$0xff]   ;;  %v1060_v54 = vld [vmem:[%s1354_s4 + $0xd8] sm:$0xff]  }
  0xa8   :  { %v1058_v52 = vld [vmem:[%s1354_s4 + $0x90] sm:$0xff]   ;;  %v1061_v55 = vld [vmem:[%s1354_s4 + $0x18] sm:$0xff]  }
  0xa9   :  { %263 = vst.msk [vmem:[#allocation3] sm:$0xff] %vm149_vm1, %v262_v57  ;;  %v196_v63 = vsel %vm195_vm3, %v170_v58, %v166_v59  ;;  %v1062_v56 = vld [vmem:[%s1354_s4 + $0x98] sm:$0xff]   ;;  %v1063_v57 = vld [vmem:[%s1354_s4 + $0x60] sm:$0xff]  }
  0xaa   :  { %v79_v60 = vpop.xlane.xlu0 %78  ;;  %v84_v61 = vpop.xlane.xlu1 %83  ;;  %v1064_v58 = vld [vmem:[%s1354_s4 + $0xe0] sm:$0xff]  }
  0xab   :  { %v174_v62 = vrot.slane %v79_v60, %v165_v32  ;;  %v178_v0 = vrot.slane %v84_v61, %v165_v32  ;;  %v1065_v59 = vld [vmem:[%s1354_s4 + $0x20] sm:$0xff]   ;;  %v1067_v61 = vld [vmem:[%s1354_s4 + $0x68] sm:$0xff]  }
  0xac   :  { %v1066_v60 = vld [vmem:[%s1354_s4 + $0xa0] sm:$0xff]  }
  0xad   :  { %v198_v1 = vsel %vm197_vm4, %v174_v62, %v196_v63  ;;  %v1068_v62 = vld [vmem:[%s1354_s4 + $0xe8] sm:$0xff]  }
  0xae   :  { %v89_v2 = vpop.xlane.xlu0 %88  ;;  %v94_v3 = vpop.xlane.xlu1 %93  ;;  %v200_v5 = vsel %vm199_vm5, %v178_v0, %v198_v1  ;;  %v1069_v63 = vld [vmem:[%s1354_s4 + $0x28] sm:$0xff]   ;;  %v1071_v1 = vld [vmem:[%s1354_s4 + $0x70] sm:$0xff]  }
  0xaf   :  { %v182_v4 = vrot.slane %v89_v2, %v165_v32  ;;  %v186_v6 = vrot.slane %v94_v3, %v165_v32  ;;  %v1070_v0 = vld [vmem:[%s1354_s4 + $0xa8] sm:$0xff]   ;;  %v1072_v2 = vld [vmem:[%s1354_s4 + $0xf0] sm:$0xff]  }
  0xb0   :  { %v278_v7 = vld [vmem:[#allocation3] sm:$0xff]  ;;  %v1073_v3 = vld [vmem:[%s1354_s4 + $0x30] sm:$0xff]  }
  0xb1   :  { %v202_v8 = vsel %vm201_vm6, %v182_v4, %v200_v5  ;;  %v279_v9 = vmul.f32 0.00390625, %v278_v7  ;;  %v1074_v4 = vld [vmem:[%s1354_s4 + $0xb0] sm:$0xff]   ;;  %v1075_v5 = vld [vmem:[%s1354_s4 + $0x78] sm:$0xff]  }
  0xb2   :  { %v99_v12 = vpop.xlane.xlu0 %98  ;;  %v104_v13 = vpop.xlane.xlu1 %103  ;;  %v204_v17 = vsel %vm203_vm7, %v186_v6, %v202_v8  ;;  %v1076_v6 = vld [vmem:[%s1354_s4 + $0xf8] sm:$0xff]  }
  0xb3   :  { %v190_v14 = vrot.slane %v99_v12, %v165_v32  ;;  %v194_v15 = vrot.slane %v104_v13, %v165_v32  ;;  %v280_v16 = vmin.f32 %v279_v9, 20.0  ;;  %v1077_v7 = vld [vmem:[%s1354_s4 + $0x38] sm:$0xff]  }
  0xb4   :  { %v1078_v8 = vld [vmem:[%s1354_s4 + $0xb8] sm:$0xff]  }
  0xb5   :  { %v206_v19 = vsel %vm205_vm8, %v190_v14, %v204_v17  ;;  %v281_v20 = vmul.f32 1.442695, %v280_v16 }
  0xb6   :  { %v208_v21 = vsel %vm207_vm9, %v194_v15, %v206_v19  ;;  %v527_v19 = vsub.s32 0, %v1199_v11 }
  0xb7   :  { %v210_v22 = vmax.f32 %v152_v18, %v208_v21  ;;  %1079 = vpow2.f32 %v281_v20  ;;  %v535_v20 = vsub.s32 2, %v1199_v11  ;;  %v523_v21 = vld [vmem:[%s1355_s3] sm:$0xf] }
  0xb9   :  { %212 = vst.msk [vmem:[#allocation2] sm:$0xff] %vm149_vm1, %v210_v22  ;;  %v531_v22 = vsub.s32 1, %v1199_v11 }
  0xc0   :  { %v267_v23 = vld [vmem:[#allocation2] sm:$0xff] }
  0xc1   :  { %v1080_v24 = vpop.eup %1079  ;;  %v268_v26 = vmin.f32 %v267_v23, 20.0 }
  0xc2   :  { %v283_v27 = vadd.f32 2.0, %v1080_v24 }
  0xc3   :  { %v269_v29 = vmul.f32 1.442695, %v268_v26  ;;  %v536_v26 = vrot.slane %v523_v21, %v535_v20 }
  0xc4   :  { %v284_v30 = vmul.f32 %v1080_v24, %v283_v27  ;;  %v528_v24 = vrot.slane %v523_v21, %v527_v19 }
  0xc5   :  { %1081 = vpow2.f32 %v269_v29 }
  0xc6   :  { %v286_v31 = vadd.f32 2.0, %v284_v30  ;;  %v285_v34 = vmul.f32 %v284_v30, %v279_v9  ;;  %v532_v30 = vrot.slane %v523_v21, %v531_v22  ;;  %v945_v22 = vld [vmem:[%s1356_s5] ss:$0 sm:$0xff] }
  0xc8   :  { %1083 = vrcp.f32 %v286_v31 }
  0xcf   :  { %v1082_v32 = vpop.eup %1081 }
  0xd0   :  { %v271_v33 = vadd.f32 2.0, %v1082_v32 }
  0xd2   :  { %v1084_v35 = vpop.eup %1083  ;;  %v272_v36 = vmul.f32 %v1082_v32, %v271_v33 }
  0xd3   :  { %v288_v37 = vmul.f32 %v1084_v35, %v285_v34 }
  0xd4   :  { %v274_v38 = vadd.f32 2.0, %v272_v36  ;;  %v273_v40 = vmul.f32 %v272_v36, %v267_v23  ;;  %v539_v23 = vsub.s32 3, %v1199_v11 }
  0xd5   :  { %v289_v39 = vpack.c.bf16 %v288_v37, %v288_v37 }
  0xd6   :  { %1085 = vrcp.f32 %v274_v38  ;;  %v540_v31 = vrot.slane %v523_v21, %v539_v23 }
  0xd7   :  { %938 = vmatmul.mubr.msk.bf16.vlgmr.msra.gmra.mrb[0].mxu0 %vm149_vm1, %v289_v39  ;;  %940 = vmatmul.mubr.msk.bf16.vlgmr.msra.gmra.mrb[0].mxu1 %vm149_vm1, %v289_v39 }
  0xd8   :  { %442 = vmatpush1.bf16.msra.mxu0 %v1210_v25  ;;  %483 = vmatpush1.bf16.msra.mxu1 %v1214_v28  ;;  %v1048_v25 = vld [vmem:[%s1354_s4 + $0xc0] sm:$0xff]  }
  0xd9   :  { %473 = vmatprep.mubr.bf16.mxu0 %v1106_v10  ;;  %514 = vmatprep.mubr.bf16.mxu1 %v1106_v10  ;;  %v1049_v10 = vld [vmem:[%s1354_s4] sm:$0xff]  }
  0xda   :  { %997 = vmatprep.subr.bf16.mxu0 %v1047_v44  ;;  %1019 = vmatprep.subr.bf16.mxu1 %v1048_v25  ;;  %v1050_v28 = vld [vmem:[%s1354_s4 + $0x80] sm:$0xff]  }
  0xe0   :  { %v1086_v41 = vpop.eup %1085 }
  0xe1   :  { %v276_v42 = vmul.f32 %v1086_v41, %v273_v40 }
  0xe3   :  { %v277_v43 = vpack.c.bf16 %v276_v42, %v276_v42 }
  0xe5   :  { %942 = vmatmul.mubr.msk.bf16.vlgmr.msra.gmra.mrb[4].mxu0 %vm149_vm1, %v277_v43  ;;  %944 = vmatmul.mubr.msk.bf16.vlgmr.msra.gmra.mrb[4].mxu1 %vm149_vm1, %v277_v43 }
  0xe6   :  { %998 = vmatpush3.bf16.msra.mxu0 %v1049_v10  ;;  %1020 = vmatpush3.bf16.msra.mxu1 %v1050_v28 }
  0xe7   :  { %999 = vmatprep.subr.bf16.mxu0 %v1051_v45  ;;  %1021 = vmatprep.subr.bf16.mxu1 %v1052_v46 }
  0xea   :  { %1000 = vmatpush3.bf16.msra.mxu0 %v1053_v47  ;;  %1022 = vmatpush3.bf16.msra.mxu1 %v1054_v48 }
  0xeb   :  { %1001 = vmatprep.subr.bf16.mxu0 %v1055_v49  ;;  %1023 = vmatprep.subr.bf16.mxu1 %v1056_v50 }
  0xee   :  { %1002 = vmatpush3.bf16.msra.mxu0 %v1057_v51  ;;  %1024 = vmatpush3.bf16.msra.mxu1 %v1058_v52 }
  0xef   :  { %1003 = vmatprep.subr.bf16.mxu0 %v1059_v53  ;;  %1025 = vmatprep.subr.bf16.mxu1 %v1060_v54 }
  0xf2   :  { %1004 = vmatpush3.bf16.msra.mxu0 %v1061_v55  ;;  %1026 = vmatpush3.bf16.msra.mxu1 %v1062_v56 }
  0xf3   :  { %1005 = vmatprep.subr.bf16.mxu0 %v1063_v57  ;;  %1027 = vmatprep.subr.bf16.mxu1 %v1064_v58 }
  0xf6   :  { %1006 = vmatpush3.bf16.msra.mxu0 %v1065_v59  ;;  %1028 = vmatpush3.bf16.msra.mxu1 %v1066_v60 }
  0xf7   :  { %1007 = vmatprep.subr.bf16.mxu0 %v1067_v61  ;;  %1029 = vmatprep.subr.bf16.mxu1 %v1068_v62 }
  0xfa   :  { %1008 = vmatpush3.bf16.msra.mxu0 %v1069_v63  ;;  %1030 = vmatpush3.bf16.msra.mxu1 %v1070_v0 }
  0xfb   :  { %1009 = vmatprep.subr.bf16.mxu0 %v1071_v1  ;;  %1031 = vmatprep.subr.bf16.mxu1 %v1072_v2 }
  0xfe   :  { %1010 = vmatpush3.bf16.msra.mxu0 %v1073_v3  ;;  %1032 = vmatpush3.bf16.msra.mxu1 %v1074_v4 }
  0xff   :  { %1011 = vmatprep.subr.bf16.mxu0 %v1075_v5  ;;  %1033 = vmatprep.subr.bf16.mxu1 %v1076_v6 }
 0x102   :  { %1012 = vmatpush3.bf16.msra.mxu0 %v1077_v7  ;;  %1034 = vmatpush3.bf16.msra.mxu1 %v1078_v8 }
 0x1aa   :  { %v360_v9 = vpop.f32.mrb[0].mxu0  ;;  %v401_v12 = vpop.f32.mrb[0].mxu1 }
 0x1ab   :  { %v362_v13 = vpop.f32.mrb[1].mxu0  ;;  %v403_v14 = vpop.f32.mrb[1].mxu1 }
 0x1ac   :  { %v364_v15 = vpop.f32.mrb[2].mxu0  ;;  %v405_v16 = vpop.f32.mrb[2].mxu1 }
 0x1ad   :  { %v365_v17 = vpop.f32.mrb[3].mxu0  ;;  %v406_v18 = vpop.f32.mrb[3].mxu1 }
 0x1b8   :  { %v475_v27 = vpop.f32.mrb[4].mxu0  ;;  %v516_v29 = vpop.f32.mrb[4].mxu1 }
 0x1b9   :  { %v476_v32 = vadd.f32 %v475_v27, %v360_v9  ;;  %v517_v33 = vadd.f32 %v516_v29, %v401_v12  ;;  %v477_v34 = vpop.f32.mrb[5].mxu0  ;;  %v518_v35 = vpop.f32.mrb[5].mxu1 }
 0x1ba   :  { %v478_v36 = vadd.f32 %v477_v34, %v362_v13  ;;  %v519_v37 = vadd.f32 %v518_v35, %v403_v14  ;;  %v479_v38 = vpop.f32.mrb[6].mxu0  ;;  %v520_v39 = vpop.f32.mrb[6].mxu1 }
 0x1bb   :  { %v545_v40 = vadd.f32 %v528_v24, %v476_v32  ;;  %v547_v41 = vadd.f32 %v536_v26, %v517_v33  ;;  %v480_v42 = vpop.f32.mrb[7].mxu0  ;;  %v521_v43 = vpop.f32.mrb[7].mxu1 }
 0x1bc   :  { %v546_v44 = vadd.f32 %v532_v30, %v478_v36  ;;  %v548_v11 = vadd.f32 %v540_v31, %v519_v37 }
 0x1bd   :  { %v549_v25 = vmin.f32 %v545_v40, 20.0  ;;  %v551_v10 = vmin.f32 %v547_v41, 20.0 }
 0x1be   :  { %v550_v28 = vmin.f32 %v546_v44, 20.0  ;;  %v552_v45 = vmin.f32 %v548_v11, 20.0 }
 0x1bf   :  { %v553_v46 = vmul.f32 1.442695, %v549_v25  ;;  %v557_v47 = vmul.f32 1.442695, %v551_v10 }
 0x1c0   :  { %v555_v48 = vmul.f32 1.442695, %v550_v28  ;;  %v559_v49 = vmul.f32 1.442695, %v552_v45 }
 0x1c1   :  { %1087 = vpow2.f32 %v553_v46 }
 0x1c2   :  { %1089 = vpow2.f32 %v557_v47 }
 0x1c3   :  { %1091 = vpow2.f32 %v555_v48 }
 0x1c4   :  { %1093 = vpow2.f32 %v559_v49 }
 0x1cb   :  { %v1088_v50 = vpop.eup %1087 }
 0x1cc   :  { %v1090_v51 = vpop.eup %1089  ;;  %v561_v52 = vadd.f32 2.0, %v1088_v50 }
 0x1cd   :  { %v1092_v53 = vpop.eup %1091  ;;  %v563_v54 = vadd.f32 2.0, %v1090_v51 }
 0x1ce   :  { %v1094_v55 = vpop.eup %1093  ;;  %v565_v56 = vmul.f32 %v1088_v50, %v561_v52  ;;  %v562_v57 = vadd.f32 2.0, %v1092_v53 }
 0x1cf   :  { %v567_v58 = vmul.f32 %v1090_v51, %v563_v54  ;;  %v564_v59 = vadd.f32 2.0, %v1094_v55 }
 0x1d0   :  { %v573_v60 = vadd.f32 2.0, %v565_v56  ;;  %v566_v61 = vmul.f32 %v1092_v53, %v562_v57  ;;  %v569_v3 = vmul.f32 %v565_v56, %v545_v40 }
 0x1d1   :  { %v575_v62 = vadd.f32 2.0, %v567_v58  ;;  %v568_v63 = vmul.f32 %v1094_v55, %v564_v59  ;;  %v571_v5 = vmul.f32 %v567_v58, %v547_v41 }
 0x1d2   :  { %1095 = vrcp.f32 %v573_v60  ;;  %v574_v0 = vadd.f32 2.0, %v566_v61  ;;  %v570_v6 = vmul.f32 %v566_v61, %v546_v44 }
 0x1d3   :  { %1097 = vrcp.f32 %v575_v62  ;;  %v576_v1 = vadd.f32 2.0, %v568_v63  ;;  %v572_v9 = vmul.f32 %v568_v63, %v548_v11 }
 0x1d4   :  { %1099 = vrcp.f32 %v574_v0 }
 0x1d5   :  { %1101 = vrcp.f32 %v576_v1 }
 0x1dc   :  { %v1096_v2 = vpop.eup %1095 }
 0x1dd   :  { %v1098_v4 = vpop.eup %1097  ;;  %v581_v8 = vmul.f32 %v1096_v2, %v569_v3 }
 0x1de   :  { %v1100_v7 = vpop.eup %1099  ;;  %v583_v13 = vmul.f32 %v1098_v4, %v571_v5 }
 0x1df   :  { %v1102_v12 = vpop.eup %1101  ;;  %v582_v14 = vmul.f32 %v1100_v7, %v570_v6  ;;  %v585_v17 = vpack.c.bf16 %v581_v8, %v581_v8 }
 0x1e0   :  { %v584_v15 = vmul.f32 %v1102_v12, %v572_v9  ;;  %v587_v19 = vpack.c.bf16 %v583_v13, %v583_v13 }
 0x1e1   :  { %v586_v16 = vpack.c.bf16 %v582_v14, %v582_v14 }
 0x1e2   :  { %v588_v18 = vpack.c.bf16 %v584_v15, %v584_v15 }
 0x1e3   :  { %884 = vmatprep.mubr.bf16.mxu0 %v586_v16 }
 0x1e4   :  { %924 = vmatprep.mubr.bf16.mxu1 %v588_v18  ;;  %885 = vmatmul.mubr.bf16.vlgmr.msra.gmra.mrb[8].mxu0 %v585_v17 }
 0x1e5   :  { %925 = vmatmul.mubr.bf16.vlgmr.msra.gmra.mrb[8].mxu1 %v587_v19 }
 0x2b7   :  { %v1013_v20 = vpop.f32.mrb[8].mxu0 }
 0x2b8   :  { %v1035_v21 = vpop.f32.mrb[8].mxu1  ;;  %v1014_v23 = vpop.f32.mrb[9].mxu0 }
 0x2b9   :  { %v1015_v24 = vadd.f32 %v1014_v23, %v1013_v20  ;;  %v1036_v26 = vpop.f32.mrb[9].mxu1  ;;  %v1016_v27 = vpop.f32.mrb[10].mxu0 }
 0x2ba   :  { %v1037_v29 = vadd.f32 %v1036_v26, %v1035_v21  ;;  %v1038_v30 = vpop.f32.mrb[10].mxu1  ;;  %v1017_v31 = vpop.f32.mrb[11].mxu0 }
 0x2bb   :  { %v887_v32 = vadd.f32 %v1015_v24, %v945_v22  ;;  %v1039_v33 = vpop.f32.mrb[11].mxu1 }
 0x2bd   :  { %v927_v34 = vadd.f32 %v1037_v29, %v887_v32 }
 0x2bf   :  { %932 = vst [vmem:[%s1357_s6] sm:$0xff] %v927_v34 }

</bundles_post_ra>
